<compile_context>
chip_gen: v7x
topology: tpu7x:2x2x1
jax: 0.10.0
libtpu: 0.0.40
codegen_flags: <defaults>
</compile_context>

<pallas_src>
import functools

import jax
import jax.numpy as jnp
import numpy as np
from jax import lax
from jax.experimental import pallas as pl
from jax.experimental.pallas import tpu as pltpu

_OUT8 = jax.ShapeDtypeStruct((8,), jnp.float32)
_SMEM_OUT = pl.BlockSpec((8,), lambda i: (0,), memory_space=pltpu.MemorySpace.SMEM)


def _rows_and_tile(n):
    """Point-axis tiling: rows of 128 lanes, tile is a multiple of 8 sublanes."""
    rows = max(1, -(-n // 128))
    tile = 8
    while rows > tile * 8 and tile < 64:
        tile *= 2
    rows_pad = -(-rows // tile) * tile
    return rows_pad, tile


# ----------------------------------------------------------------------------
# Pallas kernels
# ----------------------------------------------------------------------------
# IDR slab channels (C=16), each a (rows_pad, 128) plane:
#   0:3 idr_rgb   3:6 rgb_gt   6:9 normals   9:12 mono_normal_gt
#   12 sdf   13 object_mask   14 both(net&obj)   15 valid(1 real / 0 pad)
def _idr_loss_kernel(slab_ref, grad_ref, out_ref, acc_ref,
                     *, alpha, n_pix, n_grad, weights):
    step = pl.program_id(0)
    last = pl.num_programs(0) - 1

    @pl.when(step == 0)
    def _init():
        for i in range(8):
            acc_ref[i] = jnp.float32(0.0)

    ch = lambda i: slab_ref[i]                      # (tile, 128) full plane
    r0, r1, r2 = ch(0), ch(1), ch(2)                # idr rgb
    g0, g1, g2 = ch(3), ch(4), ch(5)                # rgb gt
    n0, n1, n2 = ch(6), ch(7), ch(8)                # normals
    m0, m1, m2 = ch(9), ch(10), ch(11)              # mono normal gt
    sdf, obj, both, valid = ch(12), ch(13), ch(14), ch(15)

    # ---- idr rgb loss: L1(reduction='sum') over masked points ---------------
    rgb_term = (jnp.abs(r0 - g0) + jnp.abs(r1 - g1) + jnp.abs(r2 - g2)) * both

    # ---- normal losses (F.normalize eps=1e-12 -> clamp squared norm 1e-24) --
    inv_nn = lax.rsqrt(jnp.maximum(n0 * n0 + n1 * n1 + n2 * n2, 1e-24))
    inv_nm = lax.rsqrt(jnp.maximum(m0 * m0 + m1 * m1 + m2 * m2, 1e-24))
    a0, a1, a2 = n0 * inv_nn, n1 * inv_nn, n2 * inv_nn
    b0, b1, b2 = m0 * inv_nm, m1 * inv_nm, m2 * inv_nm
    nl1_term = (jnp.abs(a0 - b0) + jnp.abs(a1 - b1) + jnp.abs(a2 - b2)) * both
    ncos_term = (1.0 - (a0 * b0 + a1 * b1 + a2 * b2)) * both

    # ---- mask loss: BCE-with-logits (sum) over valid & ~(net & obj) ---------
    x = -alpha * sdf
    z = jnp.exp(-jnp.abs(x))
    bce = jnp.maximum(x, 0.0) - x * obj + jnp.log(1.0 + z)
    mask_term = bce * (valid - both)                # 0 on padded lanes

    acc_ref[0] = acc_ref[0] + jnp.sum(rgb_term)
    acc_ref[1] = acc_ref[1] + jnp.sum(nl1_term)
    acc_ref[2] = acc_ref[2] + jnp.sum(ncos_term)
    acc_ref[3] = acc_ref[3] + jnp.sum(mask_term)

    # ---- eikonal: whole (small) grad slab, padded tail = unit-x vectors -----
    @pl.when(step == 0)
    def _eik():
        qx, qy, qz = grad_ref[0], grad_ref[1], grad_ref[2]
        d = jnp.sqrt(qx * qx + qy * qy + qz * qz) - 1.0
        acc_ref[4] = acc_ref[4] + jnp.sum(d * d)

    @pl.when(step == last)
    def _fin():
        w_rgb, w_eik, w_mask, w_nl1, w_ncos = weights
        inv_n = 1.0 / float(n_pix)
        rgb_loss = acc_ref[0] * inv_n
        nl1 = acc_ref[1] * inv_n
        ncos = acc_ref[2] * inv_n
        mask_loss = acc_ref[3] * (inv_n / alpha)
        eik = acc_ref[4] * (1.0 / float(max(n_grad, 1)))
        total = (w_rgb * rgb_loss + w_eik * eik + w_mask * mask_loss
                 + w_nl1 * nl1 + w_ncos * ncos)
        out_ref[0] = rgb_loss
        out_ref[1] = nl1
        out_ref[2] = ncos
        out_ref[3] = mask_loss
        out_ref[4] = eik
        out_ref[5] = total
        out_ref[6] = jnp.float32(0.0)
        out_ref[7] = jnp.float32(0.0)


# SG slab channels (C=21):
#   0:3 sg_rgb   3:6 indir_rgb   6:9 rgb_gt   9:12 diffuse_albedo (== pred albedo)
#   12:15 xi_diffuse   15 roughness   16 xi_roughness   17:20 albedo_gt   20 both
def _sg_loss_kernel(slab_ref, out_ref, acc_ref, *, n_pix, weights):
    step = pl.program_id(0)
    last = pl.num_programs(0) - 1

    @pl.when(step == 0)
    def _init():
        for i in range(8):
            acc_ref[i] = jnp.float32(0.0)

    ch = lambda i: slab_ref[i]
    s0, s1, s2 = ch(0), ch(1), ch(2)
    i0, i1, i2 = ch(3), ch(4), ch(5)
    g0, g1, g2 = ch(6), ch(7), ch(8)
    d0, d1, d2 = ch(9), ch(10), ch(11)
    x0, x1, x2 = ch(12), ch(13), ch(14)
    rough, xrough = ch(15), ch(16)
    t0, t1, t2 = ch(17), ch(18), ch(19)
    both = ch(20)

    # sg rgb loss on pred = sg_rgb + indir_rgb (fused in-kernel)
    sg_term = (jnp.abs(s0 + i0 - g0) + jnp.abs(s1 + i1 - g1)
               + jnp.abs(s2 + i2 - g2)) * both
    # latent smooth: |diffuse - xi_diffuse| (mean over N*3) + |rough - xi_rough| (mean over N)
    sm_d = jnp.abs(d0 - x0) + jnp.abs(d1 - x1) + jnp.abs(d2 - x2)
    sm_r = jnp.abs(rough - xrough)
    # albedo loss reuses the diffuse-albedo planes (same tensor in this call path)
    alb_term = (jnp.abs(d0 - t0) + jnp.abs(d1 - t1) + jnp.abs(d2 - t2)) * both

    acc_ref[0] = acc_ref[0] + jnp.sum(sg_term)
    acc_ref[1] = acc_ref[1] + jnp.sum(sm_d)
    acc_ref[2] = acc_ref[2] + jnp.sum(sm_r)
    acc_ref[3] = acc_ref[3] + jnp.sum(alb_term)

    @pl.when(step == last)
    def _fin():
        w_sg, w_kl, w_smooth, w_alb = weights
        inv_n = 1.0 / float(n_pix)
        sg_rgb_loss = acc_ref[0] * inv_n
        smooth = acc_ref[1] * (inv_n / 3.0) + acc_ref[2] * inv_n
        albedo_loss = acc_ref[3] * inv_n
        kl_loss = 0.0  # TODO(synk): kl_loss needs external brdf encoder MLP; 0 here.
        total = (w_sg * sg_rgb_loss + w_kl * kl_loss + w_smooth * smooth
                 + w_alb * albedo_loss)
        out_ref[0] = sg_rgb_loss
        out_ref[1] = smooth
        out_ref[2] = albedo_loss
        out_ref[3] = total
        out_ref[4] = jnp.float32(0.0)
        out_ref[5] = jnp.float32(0.0)
        out_ref[6] = jnp.float32(0.0)
        out_ref[7] = jnp.float32(0.0)


# ----------------------------------------------------------------------------
# Jitted wrappers (channel-major slab packing + pallas_call in one executable)
# ----------------------------------------------------------------------------
@functools.partial(jax.jit, static_argnames=("alpha", "weights"))
def idr_losses(rgb, rgb_gt, normals, normal_gt, sdf, grad_theta,
               net_mask, obj_mask, *, alpha, weights):
    n = obj_mask.shape[0]
    m = grad_theta.shape[0]
    f32 = jnp.float32
    rows_pad, tile = _rows_and_tile(n)
    pad = rows_pad * 128 - n

    def planes(x_cn, pad_value=0.0):
        x_cn = jnp.pad(x_cn.astype(f32), ((0, 0), (0, pad)),
                       constant_values=pad_value)
        return x_cn.reshape(-1, rows_pad, 128)

    net = net_mask.reshape(n).astype(f32)
    obj = obj_mask.reshape(n).astype(f32)
    slab = jnp.concatenate([
        planes(rgb.reshape(n, 3).T),                 # 0:3
        planes(rgb_gt.reshape(-1, 3).T),             # 3:6
        planes(normals.reshape(n, 3).T),             # 6:9
        planes(normal_gt.reshape(-1, 3).T),          # 9:12
        planes(sdf.reshape(1, n)),                   # 12
        planes(obj.reshape(1, n)),                   # 13
        planes((net * obj).reshape(1, n)),           # 14 both
        planes(jnp.ones((1, n), f32)),               # 15 valid
    ], axis=0)                                       # (16, rows_pad, 128)

    # Eikonal gradients: 3 planes, padded tail = unit-x so (||g||-1)^2 == 0 there.
    m_rows = -(-max(8, -(-m // 128)) // 8) * 8
    mp = m_rows * 128
    gx = jnp.pad(grad_theta[:, 0].astype(f32), (0, mp - m), constant_values=1.0)
    gy = jnp.pad(grad_theta[:, 1].astype(f32), (0, mp - m), constant_values=0.0)
    gz = jnp.pad(grad_theta[:, 2].astype(f32), (0, mp - m), constant_values=0.0)
    grad = jnp.stack([gx, gy, gz], axis=0).reshape(3, m_rows, 128)

    kernel = functools.partial(_idr_loss_kernel, alpha=float(alpha),
                               n_pix=n, n_grad=m, weights=weights)
    return pl.pallas_call(
        kernel,
        out_shape=_OUT8,
        grid=(rows_pad // tile,),
        in_specs=[
            pl.BlockSpec((16, tile, 128), lambda i: (0, i, 0)),
            pl.BlockSpec((3, m_rows, 128), lambda i: (0, 0, 0)),
        ],
        out_specs=_SMEM_OUT,
        scratch_shapes=[pltpu.SMEM((8,), jnp.float32)],
        compiler_params=pltpu.CompilerParams(dimension_semantics=("arbitrary",)),
    )(slab, grad)


@functools.partial(jax.jit, static_argnames=("weights",))
def sg_losses(sg_rgb, indir_rgb, rgb_gt, d_diff, d_xi_diff, roughness,
              xi_roughness, albedo_gt, net_mask, obj_mask, *, weights):
    n = obj_mask.shape[0]
    f32 = jnp.float32
    rows_pad, tile = _rows_and_tile(n)
    pad = rows_pad * 128 - n

    def planes(x_cn, pad_value=0.0):
        x_cn = jnp.pad(x_cn.astype(f32), ((0, 0), (0, pad)),
                       constant_values=pad_value)
        return x_cn.reshape(-1, rows_pad, 128)

    net = net_mask.reshape(n).astype(f32)
    obj = obj_mask.reshape(n).astype(f32)
    slab = jnp.concatenate([
        planes(sg_rgb.reshape(n, 3).T),                         # 0:3
        planes(indir_rgb.reshape(n, 3).T),                      # 3:6
        planes(rgb_gt.reshape(-1, 3).T),                        # 6:9
        planes(d_diff.reshape(n, 3).T),                         # 9:12
        planes(d_xi_diff.reshape(n, 3).T),                      # 12:15
        planes(roughness.reshape(n, -1)[:, 0].reshape(1, n)),   # 15
        planes(xi_roughness.reshape(n, -1)[:, 0].reshape(1, n)),# 16
        planes(albedo_gt.reshape(-1, 3).T),                     # 17:20
        planes((net * obj).reshape(1, n)),                      # 20 both
    ], axis=0)                                                  # (21, rows_pad, 128)

    kernel = functools.partial(_sg_loss_kernel, n_pix=n, weights=weights)
    return pl.pallas_call(
        kernel,
        out_shape=_OUT8,
        grid=(rows_pad // tile,),
        in_specs=[pl.BlockSpec((21, tile, 128), lambda i: (0, i, 0))],
        out_specs=_SMEM_OUT,
        scratch_shapes=[pltpu.SMEM((8,), jnp.float32)],
        compiler_params=pltpu.CompilerParams(dimension_semantics=("arbitrary",)),
    )(slab)


class InvLossPallas:
    """JAX/Pallas port of InvLoss.forward (loss_type='L1')."""

    def __init__(self, idr_rgb_weight, eikonal_weight, mask_weight,
                 normal_l1_weight, normal_cos_weight, alpha,
                 sg_rgb_weight, kl_weight, latent_smooth_weight,
                 albedo_weight, albedo_grad_weight, brdf_multires=10):
        self.idr_rgb_weight = idr_rgb_weight
        self.eikonal_weight = eikonal_weight
        self.mask_weight = mask_weight
        self.normal_l1_weight = normal_l1_weight
        self.normal_cos_weight = normal_cos_weight
        self.alpha = alpha
        self.sg_rgb_weight = sg_rgb_weight
        self.kl_weight = kl_weight
        self.latent_smooth_weight = latent_smooth_weight
        self.albedo_weight = albedo_weight
        self.albedo_grad_weight = albedo_grad_weight
        self.brdf_multires = brdf_multires

    def forward(self, model_outputs, ground_truth, mat_model=None, train_idr=False):
        rgb_gt = ground_truth['rgb']
        net_mask = model_outputs['network_object_mask']
        obj_mask = model_outputs['object_mask']

        if train_idr:
            w = (float(self.idr_rgb_weight), float(self.eikonal_weight),
                 float(self.mask_weight), float(self.normal_l1_weight),
                 float(self.normal_cos_weight))
            out = idr_losses(
                model_outputs['idr_rgb'], rgb_gt,
                model_outputs['normals'], ground_truth['mono_normal'],
                model_outputs['sdf_output'], model_outputs['grad_theta'],
                net_mask, obj_mask, alpha=float(self.alpha), weights=w)
            return {'eikonal_loss': out[4], 'mask_loss': out[3],
                    'idr_rgb_loss': out[0], 'normal_l1_loss': out[1],
                    'normal_cos_loss': out[2], 'loss': out[5]}

        w_alb = float(self.albedo_weight) if self.albedo_weight > 0 else 0.0
        w = (float(self.sg_rgb_weight), float(self.kl_weight),
             float(self.latent_smooth_weight), w_alb)
        out = sg_losses(
            model_outputs['sg_rgb'], model_outputs['indir_rgb'], rgb_gt,
            model_outputs['diffuse_albedo'],
            model_outputs['random_xi_diffuse_albedo'],
            model_outputs['roughness'], model_outputs['random_xi_roughness'],
            ground_truth['mono_albedo'], net_mask, obj_mask, weights=w)
        # TODO(synk): kl_loss needs external `mat_model.brdf_encoder_layer` + get_embedder.
        kl_loss = jnp.float32(0.0)
        result = {'sg_rgb_loss': out[0], 'kl_loss': kl_loss,
                  'latent_smooth_loss': out[1], 'loss': out[3]}
        if self.albedo_weight > 0:
            result['albedo_loss'] = out[2]
        # TODO(synk): albedo_grad_weight>0 branch (get_albedo_grad_loss) not implemented.
        return result


# ----------------------------------------------------------------------------
# Pure-numpy references (mirror PyTorch boolean-indexing semantics)
# ----------------------------------------------------------------------------
def _ref_idr(rgb, rgb_gt, normals, normal_gt, sdf, grad, net, obj, alpha):
    net = np.asarray(net); obj = np.asarray(obj)
    both = net & obj
    n = obj.shape[0]
    rgb_loss = np.abs(np.asarray(rgb)[both] - np.asarray(rgb_gt).reshape(-1, 3)[both]).sum() / n

    def _norm(v):
        nn = np.linalg.norm(v, axis=-1, keepdims=True)
        return v / np.maximum(nn, 1e-12)

    nv = _norm(np.asarray(normals)[both])
    ng = _norm(np.asarray(normal_gt).reshape(-1, 3)[both])
    nl1 = np.abs(nv - ng).sum() / n
    ncos = (1.0 - (nv * ng).sum(-1)).sum() / n

    m = ~both
    x = -alpha * np.asarray(sdf).reshape(-1)[m]
    y = obj[m].astype(np.float32)
    bce = np.maximum(x, 0) - x * y + np.log1p(np.exp(-np.abs(x)))
    mask_loss = (1.0 / alpha) * bce.sum() / n

    g = np.asarray(grad)
    eik = ((np.linalg.norm(g, axis=1) - 1.0) ** 2).mean()
    return rgb_loss, nl1, ncos, mask_loss, eik


def _ref_sg(sg_rgb, indir_rgb, rgb_gt, d_diff, d_xi, rough, xi_rough,
            albedo, albedo_gt, net, obj):
    net = np.asarray(net); obj = np.asarray(obj)
    both = net & obj
    n = obj.shape[0]
    pred = np.asarray(sg_rgb) + np.asarray(indir_rgb)
    sg_loss = np.abs(pred[both] - np.asarray(rgb_gt).reshape(-1, 3)[both]).sum() / n
    smooth = (np.abs(np.asarray(d_diff) - np.asarray(d_xi)).mean()
              + np.abs(np.asarray(rough)[..., 0] - np.asarray(xi_rough)[..., 0]).mean())
    alb_loss = np.abs(np.asarray(albedo)[both]
                      - np.asarray(albedo_gt).reshape(-1, 3)[both]).sum() / n
    return sg_loss, smooth, alb_loss


# ----------------------------------------------------------------------------
if __name__ == "__main__":
    key = jax.random.PRNGKey(0)
    # Deliberately NOT multiples of 128 to exercise the padding path.
    N, M = 300, 70

    ks = jax.random.split(key, 16)
    model_outputs = {
        'idr_rgb':                  jax.random.uniform(ks[0], (N, 3), jnp.float32),
        'sg_rgb':                   jax.random.uniform(ks[1], (N, 3), jnp.float32),
        'indir_rgb':                jax.random.uniform(ks[2], (N, 3), jnp.float32) * 0.1,
        'normals':                  jax.random.normal(ks[3], (N, 3), jnp.float32),
        'sdf_output':               jax.random.normal(ks[4], (N, 1), jnp.float32) * 0.1,
        'grad_theta':               jax.random.normal(ks[5], (M, 3), jnp.float32),
        'diffuse_albedo':           jax.random.uniform(ks[6], (N, 3), jnp.float32),
        'random_xi_diffuse_albedo': jax.random.uniform(ks[7], (N, 3), jnp.float32),
        'roughness':                jax.random.uniform(ks[8], (N, 1), jnp.float32),
        'random_xi_roughness':      jax.random.uniform(ks[9], (N, 1), jnp.float32),
        'network_object_mask':      jax.random.bernoulli(ks[10], 0.7, (N,)),
        'object_mask':              jax.random.bernoulli(ks[11], 0.7, (N,)),
        'points':                   jax.random.normal(ks[12], (N, 3), jnp.float32),
    }
    ground_truth = {
        'rgb':         jax.random.uniform(ks[13], (1, N, 3), jnp.float32),
        'mono_normal': jax.random.normal(ks[14], (1, N, 3), jnp.float32),
        'mono_albedo': jax.random.uniform(ks[15], (1, N, 3), jnp.float32),
    }

    loss_mod = InvLossPallas(
        idr_rgb_weight=1.0, eikonal_weight=0.1, mask_weight=100.0,
        normal_l1_weight=0.05, normal_cos_weight=0.05, alpha=50.0,
        sg_rgb_weight=1.0, kl_weight=0.01, latent_smooth_weight=0.1,
        albedo_weight=0.5, albedo_grad_weight=0.0)

    # ---- train_idr=True branch ----------------------------------------------
    out_idr = loss_mod.forward(model_outputs, ground_truth, train_idr=True)
    jax.block_until_ready(out_idr['loss'])

    ref = _ref_idr(model_outputs['idr_rgb'], ground_truth['rgb'],
                   model_outputs['normals'], ground_truth['mono_normal'],
                   model_outputs['sdf_output'], model_outputs['grad_theta'],
                   model_outputs['network_object_mask'], model_outputs['object_mask'],
                   50.0)
    got = [out_idr['idr_rgb_loss'], out_idr['normal_l1_loss'], out_idr['normal_cos_loss'],
           out_idr['mask_loss'], out_idr['eikonal_loss']]
    for g, r in zip(got, ref):
        np.testing.assert_allclose(np.asarray(g), r, rtol=1e-4, atol=1e-5)

    # ---- train_idr=False branch (sg / smooth / albedo) -----------------------
    out_sg = loss_mod.forward(model_outputs, ground_truth, train_idr=False)
    jax.block_until_ready(out_sg['loss'])

    ref_sg = _ref_sg(model_outputs['sg_rgb'], model_outputs['indir_rgb'],
                     ground_truth['rgb'], model_outputs['diffuse_albedo'],
                     model_outputs['random_xi_diffuse_albedo'],
                     model_outputs['roughness'], model_outputs['random_xi_roughness'],
                     model_outputs['diffuse_albedo'], ground_truth['mono_albedo'],
                     model_outputs['network_object_mask'], model_outputs['object_mask'])
    got_sg = [out_sg['sg_rgb_loss'], out_sg['latent_smooth_loss'], out_sg['albedo_loss']]
    for g, r in zip(got_sg, ref_sg):
        np.testing.assert_allclose(np.asarray(g), r, rtol=1e-4, atol=1e-5)

    print("KERNEL_OK")
</pallas_src>

<mosaic_0001>
module attributes {stable_mosaic.version = 11 : i64} {
  func.func @_idr_loss_kernel(%arg0: i32, %arg1: memref<16x8x128xf32, #tpu.memory_space<vmem>>, %arg2: memref<3x8x128xf32, #tpu.memory_space<vmem>>, %arg3: memref<8xf32, #tpu.memory_space<smem>>, %arg4: memref<8xf32, #tpu.memory_space<smem>>) attributes {dimension_semantics = [#tpu.dimension_semantics<arbitrary>], iteration_bounds = array<i64: 1>, scalar_prefetch = 0 : i64, scratch_operands = 1 : i64, tpu.core_type = #tpu.core_type<tc>, window_params = [{transform_indices = @transform_0, window_bounds = array<i64: 16, 8, 128>}, {pipeline_mode = #tpu.pipeline_mode<synchronous>, transform_indices = @transform_1, window_bounds = array<i64: 3, 8, 128>}, {transform_indices = @transform_2, window_bounds = array<i64: 8>}]} {
    %c0_i32 = arith.constant 0 : i32
    %0 = arith.cmpi eq, %arg0, %c0_i32 : i32
    %1 = arith.extui %0 : i1 to i32
    %c0_i32_0 = arith.constant 0 : i32
    %2 = arith.cmpi ne, %1, %c0_i32_0 : i32
    scf.if %2 {
      %cst_55 = arith.constant 0.000000e+00 : f32
      %c0_56 = arith.constant 0 : index
      %133 = memref.load %arg4[%c0_56] : memref<8xf32, #tpu.memory_space<smem>>
      memref.store %cst_55, %arg4[%c0_56] : memref<8xf32, #tpu.memory_space<smem>>
      %cst_57 = arith.constant 0.000000e+00 : f32
      %c1_58 = arith.constant 1 : index
      %134 = memref.load %arg4[%c1_58] : memref<8xf32, #tpu.memory_space<smem>>
      memref.store %cst_57, %arg4[%c1_58] : memref<8xf32, #tpu.memory_space<smem>>
      %cst_59 = arith.constant 0.000000e+00 : f32
      %c2_60 = arith.constant 2 : index
      %135 = memref.load %arg4[%c2_60] : memref<8xf32, #tpu.memory_space<smem>>
      memref.store %cst_59, %arg4[%c2_60] : memref<8xf32, #tpu.memory_space<smem>>
      %cst_61 = arith.constant 0.000000e+00 : f32
      %c3_62 = arith.constant 3 : index
      %136 = memref.load %arg4[%c3_62] : memref<8xf32, #tpu.memory_space<smem>>
      memref.store %cst_61, %arg4[%c3_62] : memref<8xf32, #tpu.memory_space<smem>>
      %cst_63 = arith.constant 0.000000e+00 : f32
      %c4_64 = arith.constant 4 : index
      %137 = memref.load %arg4[%c4_64] : memref<8xf32, #tpu.memory_space<smem>>
      memref.store %cst_63, %arg4[%c4_64] : memref<8xf32, #tpu.memory_space<smem>>
      %cst_65 = arith.constant 0.000000e+00 : f32
      %c5_66 = arith.constant 5 : index
      %138 = memref.load %arg4[%c5_66] : memref<8xf32, #tpu.memory_space<smem>>
      memref.store %cst_65, %arg4[%c5_66] : memref<8xf32, #tpu.memory_space<smem>>
      %cst_67 = arith.constant 0.000000e+00 : f32
      %c6_68 = arith.constant 6 : index
      %139 = memref.load %arg4[%c6_68] : memref<8xf32, #tpu.memory_space<smem>>
      memref.store %cst_67, %arg4[%c6_68] : memref<8xf32, #tpu.memory_space<smem>>
      %cst_69 = arith.constant 0.000000e+00 : f32
      %c7_70 = arith.constant 7 : index
      %140 = memref.load %arg4[%c7_70] : memref<8xf32, #tpu.memory_space<smem>>
      memref.store %cst_69, %arg4[%c7_70] : memref<8xf32, #tpu.memory_space<smem>>
    } else {
    }
    %c0 = arith.constant 0 : index
    %c0_1 = arith.constant 0 : index
    %c0_2 = arith.constant 0 : index
    %3 = vector.load %arg1[%c0, %c0_1, %c0_2] : memref<16x8x128xf32, #tpu.memory_space<vmem>>, vector<1x8x128xf32>
    %4 = vector.shape_cast %3 : vector<1x8x128xf32> to vector<8x128xf32>
    %c1 = arith.constant 1 : index
    %c0_3 = arith.constant 0 : index
    %c0_4 = arith.constant 0 : index
    %5 = vector.load %arg1[%c1, %c0_3, %c0_4] : memref<16x8x128xf32, #tpu.memory_space<vmem>>, vector<1x8x128xf32>
    %6 = vector.shape_cast %5 : vector<1x8x128xf32> to vector<8x128xf32>
    %c2 = arith.constant 2 : index
    %c0_5 = arith.constant 0 : index
    %c0_6 = arith.constant 0 : index
    %7 = vector.load %arg1[%c2, %c0_5, %c0_6] : memref<16x8x128xf32, #tpu.memory_space<vmem>>, vector<1x8x128xf32>
    %8 = vector.shape_cast %7 : vector<1x8x128xf32> to vector<8x128xf32>
    %c3 = arith.constant 3 : index
    %c0_7 = arith.constant 0 : index
    %c0_8 = arith.constant 0 : index
    %9 = vector.load %arg1[%c3, %c0_7, %c0_8] : memref<16x8x128xf32, #tpu.memory_space<vmem>>, vector<1x8x128xf32>
    %10 = vector.shape_cast %9 : vector<1x8x128xf32> to vector<8x128xf32>
    %c4 = arith.constant 4 : index
    %c0_9 = arith.constant 0 : index
    %c0_10 = arith.constant 0 : index
    %11 = vector.load %arg1[%c4, %c0_9, %c0_10] : memref<16x8x128xf32, #tpu.memory_space<vmem>>, vector<1x8x128xf32>
    %12 = vector.shape_cast %11 : vector<1x8x128xf32> to vector<8x128xf32>
    %c5 = arith.constant 5 : index
    %c0_11 = arith.constant 0 : index
    %c0_12 = arith.constant 0 : index
    %13 = vector.load %arg1[%c5, %c0_11, %c0_12] : memref<16x8x128xf32, #tpu.memory_space<vmem>>, vector<1x8x128xf32>
    %14 = vector.shape_cast %13 : vector<1x8x128xf32> to vector<8x128xf32>
    %c6 = arith.constant 6 : index
    %c0_13 = arith.constant 0 : index
    %c0_14 = arith.constant 0 : index
    %15 = vector.load %arg1[%c6, %c0_13, %c0_14] : memref<16x8x128xf32, #tpu.memory_space<vmem>>, vector<1x8x128xf32>
    %16 = vector.shape_cast %15 : vector<1x8x128xf32> to vector<8x128xf32>
    %c7 = arith.constant 7 : index
    %c0_15 = arith.constant 0 : index
    %c0_16 = arith.constant 0 : index
    %17 = vector.load %arg1[%c7, %c0_15, %c0_16] : memref<16x8x128xf32, #tpu.memory_space<vmem>>, vector<1x8x128xf32>
    %18 = vector.shape_cast %17 : vector<1x8x128xf32> to vector<8x128xf32>
    %c8 = arith.constant 8 : index
    %c0_17 = arith.constant 0 : index
    %c0_18 = arith.constant 0 : index
    %19 = vector.load %arg1[%c8, %c0_17, %c0_18] : memref<16x8x128xf32, #tpu.memory_space<vmem>>, vector<1x8x128xf32>
    %20 = vector.shape_cast %19 : vector<1x8x128xf32> to vector<8x128xf32>
    %c9 = arith.constant 9 : index
    %c0_19 = arith.constant 0 : index
    %c0_20 = arith.constant 0 : index
    %21 = vector.load %arg1[%c9, %c0_19, %c0_20] : memref<16x8x128xf32, #tpu.memory_space<vmem>>, vector<1x8x128xf32>
    %22 = vector.shape_cast %21 : vector<1x8x128xf32> to vector<8x128xf32>
    %c10 = arith.constant 10 : index
    %c0_21 = arith.constant 0 : index
    %c0_22 = arith.constant 0 : index
    %23 = vector.load %arg1[%c10, %c0_21, %c0_22] : memref<16x8x128xf32, #tpu.memory_space<vmem>>, vector<1x8x128xf32>
    %24 = vector.shape_cast %23 : vector<1x8x128xf32> to vector<8x128xf32>
    %c11 = arith.constant 11 : index
    %c0_23 = arith.constant 0 : index
    %c0_24 = arith.constant 0 : index
    %25 = vector.load %arg1[%c11, %c0_23, %c0_24] : memref<16x8x128xf32, #tpu.memory_space<vmem>>, vector<1x8x128xf32>
    %26 = vector.shape_cast %25 : vector<1x8x128xf32> to vector<8x128xf32>
    %c12 = arith.constant 12 : index
    %c0_25 = arith.constant 0 : index
    %c0_26 = arith.constant 0 : index
    %27 = vector.load %arg1[%c12, %c0_25, %c0_26] : memref<16x8x128xf32, #tpu.memory_space<vmem>>, vector<1x8x128xf32>
    %28 = vector.shape_cast %27 : vector<1x8x128xf32> to vector<8x128xf32>
    %c13 = arith.constant 13 : index
    %c0_27 = arith.constant 0 : index
    %c0_28 = arith.constant 0 : index
    %29 = vector.load %arg1[%c13, %c0_27, %c0_28] : memref<16x8x128xf32, #tpu.memory_space<vmem>>, vector<1x8x128xf32>
    %30 = vector.shape_cast %29 : vector<1x8x128xf32> to vector<8x128xf32>
    %c14 = arith.constant 14 : index
    %c0_29 = arith.constant 0 : index
    %c0_30 = arith.constant 0 : index
    %31 = vector.load %arg1[%c14, %c0_29, %c0_30] : memref<16x8x128xf32, #tpu.memory_space<vmem>>, vector<1x8x128xf32>
    %32 = vector.shape_cast %31 : vector<1x8x128xf32> to vector<8x128xf32>
    %c15 = arith.constant 15 : index
    %c0_31 = arith.constant 0 : index
    %c0_32 = arith.constant 0 : index
    %33 = vector.load %arg1[%c15, %c0_31, %c0_32] : memref<16x8x128xf32, #tpu.memory_space<vmem>>, vector<1x8x128xf32>
    %34 = vector.shape_cast %33 : vector<1x8x128xf32> to vector<8x128xf32>
    %35 = arith.subf %4, %10 : vector<8x128xf32>
    %36 = math.absf %35 : vector<8x128xf32>
    %37 = arith.subf %6, %12 : vector<8x128xf32>
    %38 = math.absf %37 : vector<8x128xf32>
    %39 = arith.addf %36, %38 : vector<8x128xf32>
    %40 = arith.subf %8, %14 : vector<8x128xf32>
    %41 = math.absf %40 : vector<8x128xf32>
    %42 = arith.addf %39, %41 : vector<8x128xf32>
    %43 = arith.mulf %42, %32 : vector<8x128xf32>
    %44 = arith.mulf %16, %16 : vector<8x128xf32>
    %45 = arith.mulf %18, %18 : vector<8x128xf32>
    %46 = arith.addf %44, %45 : vector<8x128xf32>
    %47 = arith.mulf %20, %20 : vector<8x128xf32>
    %48 = arith.addf %46, %47 : vector<8x128xf32>
    %cst = arith.constant 1.000000e-24 : f32
    %49 = vector.broadcast %cst : f32 to vector<8x128xf32>
    %50 = arith.maximumf %48, %49 : vector<8x128xf32>
    %51 = math.rsqrt %50 : vector<8x128xf32>
    %52 = arith.mulf %22, %22 : vector<8x128xf32>
    %53 = arith.mulf %24, %24 : vector<8x128xf32>
    %54 = arith.addf %52, %53 : vector<8x128xf32>
    %55 = arith.mulf %26, %26 : vector<8x128xf32>
    %56 = arith.addf %54, %55 : vector<8x128xf32>
    %cst_33 = arith.constant 1.000000e-24 : f32
    %57 = vector.broadcast %cst_33 : f32 to vector<8x128xf32>
    %58 = arith.maximumf %56, %57 : vector<8x128xf32>
    %59 = math.rsqrt %58 : vector<8x128xf32>
    %60 = arith.mulf %16, %51 : vector<8x128xf32>
    %61 = arith.mulf %18, %51 : vector<8x128xf32>
    %62 = arith.mulf %20, %51 : vector<8x128xf32>
    %63 = arith.mulf %22, %59 : vector<8x128xf32>
    %64 = arith.mulf %24, %59 : vector<8x128xf32>
    %65 = arith.mulf %26, %59 : vector<8x128xf32>
    %66 = arith.subf %60, %63 : vector<8x128xf32>
    %67 = math.absf %66 : vector<8x128xf32>
    %68 = arith.subf %61, %64 : vector<8x128xf32>
    %69 = math.absf %68 : vector<8x128xf32>
    %70 = arith.addf %67, %69 : vector<8x128xf32>
    %71 = arith.subf %62, %65 : vector<8x128xf32>
    %72 = math.absf %71 : vector<8x128xf32>
    %73 = arith.addf %70, %72 : vector<8x128xf32>
    %74 = arith.mulf %73, %32 : vector<8x128xf32>
    %75 = arith.mulf %60, %63 : vector<8x128xf32>
    %76 = arith.mulf %61, %64 : vector<8x128xf32>
    %77 = arith.addf %75, %76 : vector<8x128xf32>
    %78 = arith.mulf %62, %65 : vector<8x128xf32>
    %79 = arith.addf %77, %78 : vector<8x128xf32>
    %cst_34 = arith.constant 1.000000e+00 : f32
    %80 = vector.broadcast %cst_34 : f32 to vector<8x128xf32>
    %81 = arith.subf %80, %79 : vector<8x128xf32>
    %82 = arith.mulf %81, %32 : vector<8x128xf32>
    %cst_35 = arith.constant -5.000000e+01 : f32
    %83 = vector.broadcast %cst_35 : f32 to vector<8x128xf32>
    %84 = arith.mulf %83, %28 : vector<8x128xf32>
    %85 = math.absf %84 : vector<8x128xf32>
    %cst_36 = arith.constant 0.000000e+00 : f32
    %86 = vector.broadcast %cst_36 : f32 to vector<8x128xf32>
    %87 = arith.subf %86, %85 : vector<8x128xf32>
    %88 = math.exp %87 : vector<8x128xf32>
    %cst_37 = arith.constant 0.000000e+00 : f32
    %89 = vector.broadcast %cst_37 : f32 to vector<8x128xf32>
    %90 = arith.maximumf %84, %89 : vector<8x128xf32>
    %91 = arith.mulf %84, %30 : vector<8x128xf32>
    %92 = arith.subf %90, %91 : vector<8x128xf32>
    %cst_38 = arith.constant 1.000000e+00 : f32
    %93 = vector.broadcast %cst_38 : f32 to vector<8x128xf32>
    %94 = arith.addf %93, %88 : vector<8x128xf32>
    %95 = math.log %94 : vector<8x128xf32>
    %96 = arith.addf %92, %95 : vector<8x128xf32>
    %97 = arith.subf %34, %32 : vector<8x128xf32>
    %98 = arith.mulf %96, %97 : vector<8x128xf32>
    %c0_39 = arith.constant 0 : index
    %99 = memref.load %arg4[%c0_39] : memref<8xf32, #tpu.memory_space<smem>>
    %100 = vector.shape_cast %43 : vector<8x128xf32> to vector<1x8x128xf32>
    %cst_40 = arith.constant dense<0.000000e+00> : vector<1xf32>
    %101 = vector.multi_reduction <add>, %100, %cst_40 [1, 2] : vector<1x8x128xf32> to vector<1xf32>
    %102 = vector.shape_cast %101 : vector<1xf32> to vector<1x1x1xf32>
    %103 = vector.extract %102[0, 0, 0] : f32 from vector<1x1x1xf32>
    %104 = arith.addf %99, %103 : f32
    %c0_41 = arith.constant 0 : index
    %105 = memref.load %arg4[%c0_41] : memref<8xf32, #tpu.memory_space<smem>>
    memref.store %104, %arg4[%c0_41] : memref<8xf32, #tpu.memory_space<smem>>
    %c1_42 = arith.constant 1 : index
    %106 = memref.load %arg4[%c1_42] : memref<8xf32, #tpu.memory_space<smem>>
    %107 = vector.shape_cast %74 : vector<8x128xf32> to vector<1x8x128xf32>
    %cst_43 = arith.constant dense<0.000000e+00> : vector<1xf32>
    %108 = vector.multi_reduction <add>, %107, %cst_43 [1, 2] : vector<1x8x128xf32> to vector<1xf32>
    %109 = vector.shape_cast %108 : vector<1xf32> to vector<1x1x1xf32>
    %110 = vector.extract %109[0, 0, 0] : f32 from vector<1x1x1xf32>
    %111 = arith.addf %106, %110 : f32
    %c1_44 = arith.constant 1 : index
    %112 = memref.load %arg4[%c1_44] : memref<8xf32, #tpu.memory_space<smem>>
    memref.store %111, %arg4[%c1_44] : memref<8xf32, #tpu.memory_space<smem>>
    %c2_45 = arith.constant 2 : index
    %113 = memref.load %arg4[%c2_45] : memref<8xf32, #tpu.memory_space<smem>>
    %114 = vector.shape_cast %82 : vector<8x128xf32> to vector<1x8x128xf32>
    %cst_46 = arith.constant dense<0.000000e+00> : vector<1xf32>
    %115 = vector.multi_reduction <add>, %114, %cst_46 [1, 2] : vector<1x8x128xf32> to vector<1xf32>
    %116 = vector.shape_cast %115 : vector<1xf32> to vector<1x1x1xf32>
    %117 = vector.extract %116[0, 0, 0] : f32 from vector<1x1x1xf32>
    %118 = arith.addf %113, %117 : f32
    %c2_47 = arith.constant 2 : index
    %119 = memref.load %arg4[%c2_47] : memref<8xf32, #tpu.memory_space<smem>>
    memref.store %118, %arg4[%c2_47] : memref<8xf32, #tpu.memory_space<smem>>
    %c3_48 = arith.constant 3 : index
    %120 = memref.load %arg4[%c3_48] : memref<8xf32, #tpu.memory_space<smem>>
    %121 = vector.shape_cast %98 : vector<8x128xf32> to vector<1x8x128xf32>
    %cst_49 = arith.constant dense<0.000000e+00> : vector<1xf32>
    %122 = vector.multi_reduction <add>, %121, %cst_49 [1, 2] : vector<1x8x128xf32> to vector<1xf32>
    %123 = vector.shape_cast %122 : vector<1xf32> to vector<1x1x1xf32>
    %124 = vector.extract %123[0, 0, 0] : f32 from vector<1x1x1xf32>
    %125 = arith.addf %120, %124 : f32
    %c3_50 = arith.constant 3 : index
    %126 = memref.load %arg4[%c3_50] : memref<8xf32, #tpu.memory_space<smem>>
    memref.store %125, %arg4[%c3_50] : memref<8xf32, #tpu.memory_space<smem>>
    %c0_i32_51 = arith.constant 0 : i32
    %127 = arith.cmpi eq, %arg0, %c0_i32_51 : i32
    %128 = arith.extui %127 : i1 to i32
    %c0_i32_52 = arith.constant 0 : i32
    %129 = arith.cmpi ne, %128, %c0_i32_52 : i32
    scf.if %129 {
      %c0_55 = arith.constant 0 : index
      %c0_56 = arith.constant 0 : index
      %c0_57 = arith.constant 0 : index
      %133 = vector.load %arg2[%c0_55, %c0_56, %c0_57] : memref<3x8x128xf32, #tpu.memory_space<vmem>>, vector<1x8x128xf32>
      %134 = vector.shape_cast %133 : vector<1x8x128xf32> to vector<8x128xf32>
      %c1_58 = arith.constant 1 : index
      %c0_59 = arith.constant 0 : index
      %c0_60 = arith.constant 0 : index
      %135 = vector.load %arg2[%c1_58, %c0_59, %c0_60] : memref<3x8x128xf32, #tpu.memory_space<vmem>>, vector<1x8x128xf32>
      %136 = vector.shape_cast %135 : vector<1x8x128xf32> to vector<8x128xf32>
      %c2_61 = arith.constant 2 : index
      %c0_62 = arith.constant 0 : index
      %c0_63 = arith.constant 0 : index
      %137 = vector.load %arg2[%c2_61, %c0_62, %c0_63] : memref<3x8x128xf32, #tpu.memory_space<vmem>>, vector<1x8x128xf32>
      %138 = vector.shape_cast %137 : vector<1x8x128xf32> to vector<8x128xf32>
      %139 = arith.mulf %134, %134 : vector<8x128xf32>
      %140 = arith.mulf %136, %136 : vector<8x128xf32>
      %141 = arith.addf %139, %140 : vector<8x128xf32>
      %142 = arith.mulf %138, %138 : vector<8x128xf32>
      %143 = arith.addf %141, %142 : vector<8x128xf32>
      %144 = math.sqrt %143 : vector<8x128xf32>
      %cst_64 = arith.constant 1.000000e+00 : f32
      %145 = vector.broadcast %cst_64 : f32 to vector<8x128xf32>
      %146 = arith.subf %144, %145 : vector<8x128xf32>
      %c4_65 = arith.constant 4 : index
      %147 = memref.load %arg4[%c4_65] : memref<8xf32, #tpu.memory_space<smem>>
      %148 = arith.mulf %146, %146 : vector<8x128xf32>
      %149 = vector.shape_cast %148 : vector<8x128xf32> to vector<1x8x128xf32>
      %cst_66 = arith.constant dense<0.000000e+00> : vector<1xf32>
      %150 = vector.multi_reduction <add>, %149, %cst_66 [1, 2] : vector<1x8x128xf32> to vector<1xf32>
      %151 = vector.shape_cast %150 : vector<1xf32> to vector<1x1x1xf32>
      %152 = vector.extract %151[0, 0, 0] : f32 from vector<1x1x1xf32>
      %153 = arith.addf %147, %152 : f32
      %c4_67 = arith.constant 4 : index
      %154 = memref.load %arg4[%c4_67] : memref<8xf32, #tpu.memory_space<smem>>
      memref.store %153, %arg4[%c4_67] : memref<8xf32, #tpu.memory_space<smem>>
    } else {
    }
    %c0_i32_53 = arith.constant 0 : i32
    %130 = arith.cmpi eq, %arg0, %c0_i32_53 : i32
    %131 = arith.extui %130 : i1 to i32
    %c0_i32_54 = arith.constant 0 : i32
    %132 = arith.cmpi ne, %131, %c0_i32_54 : i32
    scf.if %132 {
      %c0_55 = arith.constant 0 : index
      %133 = memref.load %arg4[%c0_55] : memref<8xf32, #tpu.memory_space<smem>>
      %cst_56 = arith.constant 0.00333333341 : f32
      %134 = arith.mulf %133, %cst_56 : f32
      %c1_57 = arith.constant 1 : index
      %135 = memref.load %arg4[%c1_57] : memref<8xf32, #tpu.memory_space<smem>>
      %cst_58 = arith.constant 0.00333333341 : f32
      %136 = arith.mulf %135, %cst_58 : f32
      %c2_59 = arith.constant 2 : index
      %137 = memref.load %arg4[%c2_59] : memref<8xf32, #tpu.memory_space<smem>>
      %cst_60 = arith.constant 0.00333333341 : f32
      %138 = arith.mulf %137, %cst_60 : f32
      %c3_61 = arith.constant 3 : index
      %139 = memref.load %arg4[%c3_61] : memref<8xf32, #tpu.memory_space<smem>>
      %cst_62 = arith.constant 6.66666674E-5 : f32
      %140 = arith.mulf %139, %cst_62 : f32
      %c4_63 = arith.constant 4 : index
      %141 = memref.load %arg4[%c4_63] : memref<8xf32, #tpu.memory_space<smem>>
      %cst_64 = arith.constant 0.0142857144 : f32
      %142 = arith.mulf %141, %cst_64 : f32
      %cst_65 = arith.constant 1.000000e+00 : f32
      %143 = arith.mulf %cst_65, %134 : f32
      %cst_66 = arith.constant 1.000000e-01 : f32
      %144 = arith.mulf %cst_66, %142 : f32
      %145 = arith.addf %143, %144 : f32
      %cst_67 = arith.constant 1.000000e+02 : f32
      %146 = arith.mulf %cst_67, %140 : f32
      %147 = arith.addf %145, %146 : f32
      %cst_68 = arith.constant 5.000000e-02 : f32
      %148 = arith.mulf %cst_68, %136 : f32
      %149 = arith.addf %147, %148 : f32
      %cst_69 = arith.constant 5.000000e-02 : f32
      %150 = arith.mulf %cst_69, %138 : f32
      %151 = arith.addf %149, %150 : f32
      %c0_70 = arith.constant 0 : index
      %152 = memref.load %arg3[%c0_70] : memref<8xf32, #tpu.memory_space<smem>>
      memref.store %134, %arg3[%c0_70] : memref<8xf32, #tpu.memory_space<smem>>
      %c1_71 = arith.constant 1 : index
      %153 = memref.load %arg3[%c1_71] : memref<8xf32, #tpu.memory_space<smem>>
      memref.store %136, %arg3[%c1_71] : memref<8xf32, #tpu.memory_space<smem>>
      %c2_72 = arith.constant 2 : index
      %154 = memref.load %arg3[%c2_72] : memref<8xf32, #tpu.memory_space<smem>>
      memref.store %138, %arg3[%c2_72] : memref<8xf32, #tpu.memory_space<smem>>
      %c3_73 = arith.constant 3 : index
      %155 = memref.load %arg3[%c3_73] : memref<8xf32, #tpu.memory_space<smem>>
      memref.store %140, %arg3[%c3_73] : memref<8xf32, #tpu.memory_space<smem>>
      %c4_74 = arith.constant 4 : index
      %156 = memref.load %arg3[%c4_74] : memref<8xf32, #tpu.memory_space<smem>>
      memref.store %142, %arg3[%c4_74] : memref<8xf32, #tpu.memory_space<smem>>
      %c5_75 = arith.constant 5 : index
      %157 = memref.load %arg3[%c5_75] : memref<8xf32, #tpu.memory_space<smem>>
      memref.store %151, %arg3[%c5_75] : memref<8xf32, #tpu.memory_space<smem>>
      %cst_76 = arith.constant 0.000000e+00 : f32
      %c6_77 = arith.constant 6 : index
      %158 = memref.load %arg3[%c6_77] : memref<8xf32, #tpu.memory_space<smem>>
      memref.store %cst_76, %arg3[%c6_77] : memref<8xf32, #tpu.memory_space<smem>>
      %cst_78 = arith.constant 0.000000e+00 : f32
      %c7_79 = arith.constant 7 : index
      %159 = memref.load %arg3[%c7_79] : memref<8xf32, #tpu.memory_space<smem>>
      memref.store %cst_78, %arg3[%c7_79] : memref<8xf32, #tpu.memory_space<smem>>
    } else {
    }
    return
  }
  func.func @transform_0(%arg0: i32) -> (i32, i32, i32) {
    %c0_i32 = arith.constant 0 : i32
    %c0_i32_0 = arith.constant 0 : i32
    %c0_i32_1 = arith.constant 0 : i32
    return %c0_i32, %arg0, %c0_i32_0 : i32, i32, i32
  }
  func.func @transform_1(%arg0: i32) -> (i32, i32, i32) {
    %c0_i32 = arith.constant 0 : i32
    %c0_i32_0 = arith.constant 0 : i32
    %c0_i32_1 = arith.constant 0 : i32
    %c0_i32_2 = arith.constant 0 : i32
    return %c0_i32, %c0_i32_0, %c0_i32_1 : i32, i32, i32
  }
  func.func @transform_2(%arg0: i32) -> i32 {
    %c0_i32 = arith.constant 0 : i32
    %c0_i32_0 = arith.constant 0 : i32
    return %c0_i32 : i32
  }
}

</mosaic_0001>

<bundles_post_ra>
// kernel: idr_losses.1
= control target key start
LH: loop header
LB: loop body
LE: loop exit
PB: predicated region body
PF: predicated region fallthrough
CT: control target
= control target key end

     0   :  { %s409_s0 = inlined_call_operand.vmem [shape: f32[16,8,128], index: 0, kind: input, shape index: {}]   ;;  %s410_s1 = inlined_call_operand.vmem [shape: f32[3,8,128], index: 1, kind: input, shape index: {}]   ;;  %s411_s2 = inlined_call_operand.hbm [shape: f32[8], index: 2, kind: output, shape index: {}]  }
   0x1   :  { %v32_v0 = vld [vmem:[%s409_s0] sm:$0xff]  ;;  %v256_v1 = vld [vmem:[%s409_s0 + $0x8] sm:$0xff]  ;;  %v257_v2 = vld [vmem:[%s409_s0 + $0x10] sm:$0xff] }
   0x2   :  { %v258_v3 = vld [vmem:[%s409_s0 + $0x18] sm:$0xff]  ;;  %v259_v4 = vld [vmem:[%s409_s0 + $0x20] sm:$0xff]  ;;  %v260_v5 = vld [vmem:[%s409_s0 + $0x28] sm:$0xff] }
   0x3   :  { %v63_v6 = vsub.f32 %v32_v0, %v258_v3  ;;  %v65_v7 = vsub.f32 %v256_v1, %v259_v4  ;;  %v68_v8 = vsub.f32 %v257_v2, %v260_v5  ;;  %v261_v9 = vld [vmem:[%s409_s0 + $0x30] sm:$0xff]  ;;  %v262_v10 = vld [vmem:[%s409_s0 + $0x38] sm:$0xff]  ;;  %v263_v11 = vld [vmem:[%s409_s0 + $0x40] sm:$0xff] }
   0x4   :  { %v264_v12 = vld [vmem:[%s409_s0 + $0x48] sm:$0xff]  ;;  %v265_v13 = vld [vmem:[%s409_s0 + $0x50] sm:$0xff]  ;;  %v72_v14 = vmul.f32 %v261_v9, %v261_v9  ;;  %v73_v15 = vmul.f32 %v262_v10, %v262_v10  ;;  %v75_v19 = vmul.f32 %v263_v11, %v263_v11  ;;  %v266_v20 = vld [vmem:[%s409_s0 + $0x58] sm:$0xff] }
   0x5   :  { %v64_v16 = vand.u32 2147483647, %v63_v6  ;;  %v66_v17 = vand.u32 2147483647, %v65_v7  ;;  %v69_v18 = vand.u32 2147483647, %v68_v8  ;;  %v79_v22 = vmul.f32 %v264_v12, %v264_v12 }
   0x6   :  { %v74_v21 = vadd.f32 %v73_v15, %v72_v14  ;;  %v80_v23 = vmul.f32 %v265_v13, %v265_v13  ;;  %v177_v24 = vld [vmem:[%s410_s1] sm:$0xff]  ;;  %v274_v25 = vld [vmem:[%s410_s1 + $0x8] sm:$0xff]  ;;  %v82_v27 = vmul.f32 %v266_v20, %v266_v20  ;;  %v275_v28 = vld [vmem:[%s410_s1 + $0x10] sm:$0xff] }
   0x7   :  { %v67_v26 = vadd.f32 %v66_v17, %v64_v16  ;;  %v182_v29 = vmul.f32 %v177_v24, %v177_v24  ;;  %v183_v30 = vmul.f32 %v274_v25, %v274_v25  ;;  %v267_v31 = vld [vmem:[%s409_s0 + $0x60] sm:$0xff]  ;;  %v384_v32 = vld [vmem:[%s409_s0 + $0x70] sm:$0xff]  ;;  %v185_v35 = vmul.f32 %v275_v28, %v275_v28 }
   0x8   :  { %v76_v33 = vadd.f32 %v75_v19, %v74_v21  ;;  %v81_v34 = vadd.f32 %v80_v23, %v79_v22  ;;  %v108_v36 = vmul.f32 -50.0, %v267_v31 }
   0x9   :  { %7 = vsyncpa [#allocation4], 0  ;;  %v70_v37 = vadd.f32 %v69_v18, %v67_v26  ;;  %v184_v38 = vadd.f32 %v183_v30, %v182_v29  ;;  %v270_v19 = vld [vmem:[%s409_s0 + $0x78] sm:$0xff]  ;;  %s316_s18 = smov 0.0   ;;  %s304_s10 = scalar_lea.hbm %s411_s2, 16 }
   0xa   :  { %v77_v39 = vmax.f32 %v76_v33, 1e-24  ;;  %v83_v40 = vadd.f32 %v82_v27, %v81_v34  ;;  %v109_v41 = vand.u32 2147483647, %v108_v36  ;;  %v113_v15 = vmax.f32 %v108_v36, 0.0  ;;  %240 = sst [smem:[#allocation3 + $0x6]] %s316_s18  ;;  %p305_p0 = scmp.ne.s32.totalorder %s411_s2, %s304_s10 }
   0xb   :  { %v71_v42 = vmul.f32 %v384_v32, %v70_v37  ;;  %v186_v43 = vadd.f32 %v185_v35, %v184_v38  ;;  %v120_v23 = vsub.f32 %v270_v19, %v384_v32  ;;  %242 = sst [smem:[#allocation3 + $0x7]] %s316_s18  ;;  %p308_p1 = scmp.lt.u32.totalorder %s304_s10, %s411_s2 }
   0xc   :  { %294 = vrsqrt.f32 %v77_v39  ;;  %v84_v44 = vmax.f32 %v83_v40, 1e-24  ;;  %v110_v45 = vsub.f32 0.0, %v109_v41 }
   0xd   :  { %123 = vadd.xlane.f32.xlu0 %v71_v42  ;;  %296 = vrsqrt.f32 %v186_v43  ;;  %vm189_vm0 = vcmp.eq.f32.partialorder %v186_v43, inf  ;;  %vm191_vm1 = vcmp.eq.f32.partialorder %v186_v43, 0.0  ;;  %v192_v58 = vand.u32 2147483648, %v186_v43  ;;  %p310_p2 = pnand %p308_p1, %p305_p0 }
   0xe   :  { %298 = vrsqrt.f32 %v84_v44  ;;  %v111_v46 = vmul.f32 1.442695, %v110_v45 }
  0x10   :  { %300 = vpow2.f32 %v111_v46 }
  0x16   :  { %v295_v47 = vpop.eup %294 }
  0x17   :  { %v297_v48 = vpop.eup %296  ;;  %v86_v49 = vmul.f32 %v295_v47, %v261_v9  ;;  %v87_v50 = vmul.f32 %v295_v47, %v262_v10  ;;  %v88_v51 = vmul.f32 %v295_v47, %v263_v11  ;;  %v268_v10 = vld [vmem:[%s409_s0 + $0x68] sm:$0xff] }
  0x18   :  { %v299_v52 = vpop.eup %298  ;;  %v188_v53 = vmul.f32 %v297_v48, %v186_v43  ;;  %v114_v16 = vmul.f32 %v268_v10, %v108_v36 }
  0x19   :  { %v89_v54 = vmul.f32 %v299_v52, %v264_v12  ;;  %v90_v55 = vmul.f32 %v299_v52, %v265_v13  ;;  %v91_v56 = vmul.f32 %v299_v52, %v266_v20 }
  0x1a   :  { %v301_v57 = vpop.eup %300  ;;  %v190_v1 = vsel %vm189_vm0, %v186_v43, %v188_v53  ;;  %v115_v20 = vsub.f32 %v113_v15, %v114_v16 }
  0x1b   :  { %v101_v59 = vmul.f32 %v89_v54, %v86_v49  ;;  %v102_v60 = vmul.f32 %v90_v55, %v87_v50  ;;  %v104_v61 = vmul.f32 %v91_v56, %v88_v51  ;;  %v92_v62 = vsub.f32 %v86_v49, %v89_v54 }
  0x1c   :  { %v94_v63 = vsub.f32 %v87_v50, %v90_v55  ;;  %v97_v0 = vsub.f32 %v88_v51, %v91_v56  ;;  %v116_v2 = vadd.f32 1.0, %v301_v57  ;;  %v193_v8 = vsel %vm191_vm1, %v192_v58, %v190_v1 }
  0x1d   :  { %v103_v3 = vadd.f32 %v102_v60, %v101_v59  ;;  %v93_v4 = vand.u32 2147483647, %v92_v62  ;;  %v276_v13 = vadd.f32 -1.0, %v193_v8 }
  0x1e   :  { %v95_v5 = vand.u32 2147483647, %v94_v63  ;;  %v98_v6 = vand.u32 2147483647, %v97_v0  ;;  %302 = vlog2.f32 %v116_v2 }
  0x1f   :  { %v105_v7 = vadd.f32 %v104_v61, %v103_v3  ;;  %v196_v18 = vmul.f32 %v276_v13, %v276_v13 }
  0x20   :  { %v96_v9 = vadd.f32 %v95_v5, %v93_v4 }
  0x21   :  { %v106_v11 = vsub.f32 1.0, %v105_v7 }
  0x22   :  { %v99_v12 = vadd.f32 %v98_v6, %v96_v9 }
  0x23   :  { %v107_v14 = vmul.f32 %v384_v32, %v106_v11 }
  0x24   :  { %v100_v17 = vmul.f32 %v384_v32, %v99_v12 }
  0x25   :  { %149 = vadd.xlane.f32.xlu1 %v107_v14 }
  0x26   :  { %136 = vadd.xlane.f32.xlu0 %v100_v17 }
  0x28   :  { %v303_v21 = vpop.eup %302 }
  0x29   :  { %v118_v22 = vmul.f32 0.6931472, %v303_v21 }
  0x2a   :  { %197 = vadd.xlane.f32.xlu0 %v196_v18 }
  0x2b   :  { %v119_v24 = vadd.f32 %v118_v22, %v115_v20 }
  0x2d   :  { %v121_v25 = vmul.f32 %v120_v23, %v119_v24 }
  0x2f   :  { %162 = vadd.xlane.f32.xlu1 %v121_v25 }
  0x9a   :  { %v124_v26 = vpop.xlane.xlu0 %123 }
  0x9b   :  { %v125_v27 = vrot.slane %v124_v26, 4 }
  0x9d   :  { %v126_v28 = vadd.f32 %v125_v27, %v124_v26 }
  0x9f   :  { %v127_v29 = vrot.slane %v126_v28, 2 }
  0xa1   :  { %v128_v30 = vadd.f32 %v127_v29, %v126_v28 }
  0xa3   :  { %v129_v31 = vrot.slane %v128_v30, 1 }
  0xa5   :  { %v130_v33 = vadd.f32 %v129_v31, %v128_v30 }
  0xa7   :  { %282 = vpush %v130_v33 }
  0xb2   :  { %v150_v34 = vpop.xlane.xlu1 %149 }
  0xb3   :  { %v151_v35 = vrot.slane %v150_v34, 4  ;;  %v137_v36 = vpop.xlane.xlu0 %136 }
  0xb4   :  { %v138_v37 = vrot.slane %v137_v36, 4 }
  0xb5   :  { %v152_v32 = vadd.f32 %v151_v35, %v150_v34 }
  0xb6   :  { %v139_v38 = vadd.f32 %v138_v37, %v137_v36 }
  0xb7   :  { %v153_v39 = vrot.slane %v152_v32, 2  ;;  %v198_v40 = vpop.xlane.xlu0 %197 }
  0xb8   :  { %v140_v41 = vrot.slane %v139_v38, 2  ;;  %v199_v42 = vrot.slane %v198_v40, 4 }
  0xb9   :  { %v154_v43 = vadd.f32 %v153_v39, %v152_v32 }
  0xba   :  { %v200_v44 = vadd.f32 %v199_v42, %v198_v40  ;;  %v141_v45 = vadd.f32 %v140_v41, %v139_v38 }
  0xbb   :  { %v155_v46 = vrot.slane %v154_v43, 1 }
  0xbc   :  { %v201_v47 = vrot.slane %v200_v44, 2  ;;  %v163_v48 = vpop.xlane.xlu1 %162  ;;  %v142_v49 = vrot.slane %v141_v45, 1 }
  0xbd   :  { %v164_v50 = vrot.slane %v163_v48, 4  ;;  %v156_v51 = vadd.f32 %v155_v46, %v154_v43 }
  0xbe   :  { %v143_v52 = vadd.f32 %v142_v49, %v141_v45  ;;  %v202_v54 = vadd.f32 %v201_v47, %v200_v44 }
  0xbf   :  { %v165_v53 = vadd.f32 %v164_v50, %v163_v48 }
  0xc0   :  { %284 = vpush %v143_v52  ;;  %v203_v57 = vrot.slane %v202_v54, 1 }
  0xc1   :  { %v166_v55 = vrot.slane %v165_v53, 2  ;;  %286 = vpush %v156_v51 }
  0xc2   :  { %v204_v60 = vadd.f32 %v203_v57, %v202_v54 }
  0xc3   :  { %v167_v56 = vadd.f32 %v166_v55, %v165_v53 }
  0xc5   :  { %v168_v58 = vrot.slane %v167_v56, 1 }
  0xc7   :  { %v169_v59 = vadd.f32 %v168_v58, %v167_v56 }
  0xc9   :  { %288 = vpush %v169_v59 }
  0xca   :  { %290 = vpush %v204_v60 }
  0xd8   :  { %s283_s0 = spop %282 }
  0xd9   :  { %s210_s19 = smul.f32 0.0033333334, %s283_s0 }
  0xdb   :  { %228 = sst [smem:[#allocation3]] %s210_s19 }
  0xf1   :  { %s285_s20 = spop %284 }
  0xf2   :  { %s212_s21 = smul.f32 0.0033333334, %s285_s20  ;;  %s287_s22 = spop %286 }
  0xf3   :  { %s214_s23 = smul.f32 0.0033333334, %s287_s22 }
  0xf4   :  { %230 = sst [smem:[#allocation3 + $0x1]] %s212_s21  ;;  %s223_s3 = smul.f32 0.05, %s212_s21 }
  0xf5   :  { %232 = sst [smem:[#allocation3 + $0x2]] %s214_s23  ;;  %s225_s5 = smul.f32 0.05, %s214_s23 }
  0xfa   :  { %s289_s24 = spop %288 }
  0xfb   :  { %s216_s25 = smul.f32 6.666667e-05, %s289_s24  ;;  %s291_s26 = spop %290 }
  0xfc   :  { %s218_s27 = smul.f32 0.014285714, %s291_s26 }
  0xfd   :  { %234 = sst [smem:[#allocation3 + $0x3]] %s216_s25  ;;  %s221_s29 = smul.f32 100.0, %s216_s25 }
  0xfe   :  { %s219_s28 = smul.f32 0.1, %s218_s27  ;;  %236 = sst [smem:[#allocation3 + $0x4]] %s218_s27 }
 0x100   :  { %s220_s30 = sadd.f32 %s219_s28, %s210_s19 }
 0x102   :  { %s222_s4 = sadd.f32 %s221_s29, %s220_s30 }
 0x104   :  { %s224_s6 = sadd.f32 %s223_s3, %s222_s4 }
 0x106   :  { %s226_s7 = sadd.f32 %s225_s5, %s224_s6 }
 0x108   :  { %238 = sst [smem:[#allocation3 + $0x5]] %s226_s7 }
 0x109   :  { %313 = shalt.err (!%p310_p2)
}
 0x10a   :  { %s317_s1 = smov [#allocation3]  }
 0x10b   :  { %250 = dma.smem_to_hbm %s317_s1, 16, %s411_s2, [#allocation4]  }
 0x10c   :  { %314 = dma.done.wait [#allocation4], 16  }
 0x10d   :  { %315 = vsyncadd [#allocation4], 4294967280 }
 0x10e   :  { %254 = sfence }
 0x10f   :  { %255 = vsyncpa [#allocation4], 1 }

</bundles_post_ra>
